<compile_context>
chip_gen: v7x
topology: tpu7x:2x2x1
jax: 0.10.0
libtpu: 0.0.40
codegen_flags: <defaults>
</compile_context>

<pallas_src>
import functools
import math

import jax
import jax.numpy as jnp
from jax.experimental import pallas as pl
from jax.experimental.pallas import tpu as pltpu

DEFAULT_IGNORE_INDEX = -100


@functools.lru_cache(maxsize=1)
def _vmem_capacity_bytes():
    """Physical VMEM per TensorCore; conservative (v7x-sized) fallback."""
    try:
        info = pltpu.get_tpu_info()
        for name in ("vmem_capacity_bytes", "vmem_size_bytes", "vmem_bytes"):
            cap = getattr(info, name, None)
            if cap:
                return int(min(max(int(cap), 32 << 20), 128 << 20))
    except Exception:
        pass
    return 64 << 20


def _align_for(dtype):
    # sublane packing: 8 rows (f32) / 16 (bf16) / 32 (int8, fp8)
    return max(8, 32 // jnp.dtype(dtype).itemsize)


def _budgets(cap):
    # ~40% of physical VMEM for (double-buffered input tile + f32 temporaries);
    # vmem_limit_bytes is a ceiling (not a reservation), so ask for ~80%.
    usable = min((cap * 2) // 5, 56 << 20)
    vmem_limit = min((cap * 4) // 5, 104 << 20)
    return usable, vmem_limit


# ----------------------------------------------------------------------------
# Kernels
# ----------------------------------------------------------------------------
def _make_rowmajor_kernel(n_rows, row_tile, num_classes, has_weight, ignore_index):
    """Flat (N, C) path: rows on sublanes, classes on lanes.

    Emits per-tile partial sums (sum(w * nll), sum(w)) as one (8,128) splat each.
    """

    def kernel(x_ref, t_ref, *rest):
        if has_weight:
            cw_ref, wnll_ref, wsum_ref = rest
        else:
            wnll_ref, wsum_ref = rest

        x = x_ref[...].astype(jnp.float32)                         # (rt, C)
        t = t_ref[...]                                             # (rt, 1) int32

        # TODO(synk): for 100K+ vocabularies add a class-dim chunked online
        # logsumexp so the f32 upcast / exp temporaries stay chunk-sized.
        m = jnp.max(x, axis=-1, keepdims=True)                     # (rt, 1)
        lse = jnp.log(jnp.sum(jnp.exp(x - m), axis=-1, keepdims=True)) + m
        # TODO(synk): on v7x with bf16 logits the single EUP (exp) can become
        # the binding slot; a bf16 exp with f32 accumulation would recover it.

        cls = jax.lax.broadcasted_iota(jnp.int32, (1, num_classes), 1)
        onehot = cls == t                                          # (rt, C) by broadcast
        tgt = jnp.sum(jnp.where(onehot, x, 0.0), axis=-1, keepdims=True)
        nll = lse - tgt                                            # (rt, 1)

        valid = t != ignore_index                                  # (rt, 1)
        if has_weight:
            cw = cw_ref[...]                                       # (1, C) f32
            w = jnp.sum(jnp.where(onehot, cw, 0.0), axis=-1, keepdims=True)
            w = jnp.where(valid, w, 0.0)
        else:
            w = valid.astype(jnp.float32)

        # Mask the ragged last tile (rows >= n_rows hold stale VMEM garbage).
        row = pl.program_id(0) * row_tile + jax.lax.broadcasted_iota(
            jnp.int32, (row_tile, 1), 0)
        inb = row < n_rows
        contrib = jnp.where(inb, w * nll, 0.0)
        w_valid = jnp.where(inb, w, 0.0)

        wnll_ref[...] = jnp.full((1, 8, 128), jnp.sum(contrib), dtype=jnp.float32)
        wsum_ref[...] = jnp.full((1, 8, 128), jnp.sum(w_valid), dtype=jnp.float32)

    return kernel


def _make_spatial_kernel(s_total, s_tile, num_classes, has_weight, ignore_index):
    """NCHW path: classes on sublanes, pixels on lanes (no HBM transpose)."""

    def kernel(x_ref, t_ref, *rest):
        if has_weight:
            cw_ref, wnll_ref, wsum_ref = rest
        else:
            wnll_ref, wsum_ref = rest

        x = x_ref[0].astype(jnp.float32)                           # (C, ts)
        t = t_ref[...]                                             # (1, ts) int32

        m = jnp.max(x, axis=0, keepdims=True)                      # (1, ts)
        lse = jnp.log(jnp.sum(jnp.exp(x - m), axis=0, keepdims=True)) + m

        cls = jax.lax.broadcasted_iota(jnp.int32, (num_classes, 1), 0)
        onehot = cls == t                                          # (C, ts)
        tgt = jnp.sum(jnp.where(onehot, x, 0.0), axis=0, keepdims=True)
        nll = lse - tgt                                            # (1, ts)

        valid = t != ignore_index                                  # (1, ts)
        if has_weight:
            cw = cw_ref[...]                                       # (C, 1) f32
            w = jnp.sum(jnp.where(onehot, cw, 0.0), axis=0, keepdims=True)
            w = jnp.where(valid, w, 0.0)
        else:
            w = valid.astype(jnp.float32)

        # Mask the ragged last spatial tile.
        col = pl.program_id(1) * s_tile + jax.lax.broadcasted_iota(
            jnp.int32, (1, s_tile), 1)
        inb = col < s_total
        contrib = jnp.where(inb, w * nll, 0.0)
        w_valid = jnp.where(inb, w, 0.0)

        wnll_ref[...] = jnp.full((1, 1, 8, 128), jnp.sum(contrib), dtype=jnp.float32)
        wsum_ref[...] = jnp.full((1, 1, 8, 128), jnp.sum(w_valid), dtype=jnp.float32)

    return kernel


# ----------------------------------------------------------------------------
# Wrappers
# ----------------------------------------------------------------------------
def _flat_loss(logits, targets, class_weight, row_tile, ignore_index):
    n, c = logits.shape
    t = targets.reshape(n, 1).astype(jnp.int32)

    itemsize = jnp.dtype(logits.dtype).itemsize
    align = _align_for(logits.dtype)
    cap = _vmem_capacity_bytes()
    usable, vmem_limit = _budgets(cap)

    # Bytes per row: double-buffered logits tile + in-kernel f32/bool temps.
    per_row = c * (2 * itemsize + 14) + 64
    rt = usable // per_row if row_tile is None else int(row_tile)
    rt = min(int(rt), 32768)
    rt = max(align, (rt // align) * align)

    if n < align:                          # tiny batch: pad to one aligned block
        pad = align - n
        logits = jnp.pad(logits, ((0, pad), (0, 0)))
        t = jnp.pad(t, ((0, pad), (0, 0)))
        rt = align
        n_rows_present = align
    else:
        rt = min(rt, (n // align) * align)  # only the *last* block is ragged
        n_rows_present = n

    num_tiles = (n_rows_present + rt - 1) // rt
    has_weight = class_weight is not None

    in_specs = [
        pl.BlockSpec((rt, c), lambda i: (i, 0)),
        pl.BlockSpec((rt, 1), lambda i: (i, 0)),
    ]
    args = [logits, t]
    if has_weight:
        cw = jnp.asarray(class_weight, jnp.float32).reshape(1, c)
        in_specs.append(pl.BlockSpec((1, c), lambda i: (0, 0)))
        args.append(cw)

    out_shape = (jax.ShapeDtypeStruct((num_tiles, 8, 128), jnp.float32),
                 jax.ShapeDtypeStruct((num_tiles, 8, 128), jnp.float32))
    out_specs = [pl.BlockSpec((1, 8, 128), lambda i: (i, 0, 0)),
                 pl.BlockSpec((1, 8, 128), lambda i: (i, 0, 0))]

    kernel = _make_rowmajor_kernel(n, rt, c, has_weight, ignore_index)
    wnll, wsum = pl.pallas_call(
        kernel,
        out_shape=out_shape,
        grid_spec=pltpu.PrefetchScalarGridSpec(
            num_scalar_prefetch=0,
            grid=(num_tiles,),
            in_specs=in_specs,
            out_specs=out_specs,
        ),
        compiler_params=pltpu.CompilerParams(
            dimension_semantics=("parallel",),   # independent tiles (both v7x TCs)
            vmem_limit_bytes=int(vmem_limit),
        ),
    )(*args)
    return jnp.sum(wnll[:, 0, 0]), jnp.sum(wsum[:, 0, 0])


def _spatial_loss(logits, targets, class_weight, spatial_tile, ignore_index):
    nb, c = logits.shape[0], logits.shape[1]
    s = math.prod(logits.shape[2:])
    # (N, C, d1, ..., dk) -> (N, C, S): contiguous reshape, NO transpose copy.
    x = logits.reshape(nb, c, s)
    t = targets.reshape(nb, s).astype(jnp.int32)

    itemsize = jnp.dtype(x.dtype).itemsize
    cap = _vmem_capacity_bytes()
    usable, vmem_limit = _budgets(cap)

    per_col = c * (2 * itemsize + 14) + 64
    ts = usable // per_col if spatial_tile is None else int(spatial_tile)
    if s <= 128 or ts >= s:
        ts = s                                    # whole spatial extent per block
    else:
        ts = max(128, (int(ts) // 128) * 128)     # lane-aligned; ragged tail masked
    s_tiles = (s + ts - 1) // ts
    has_weight = class_weight is not None

    in_specs = [
        pl.BlockSpec((1, c, ts), lambda b, j: (b, 0, j)),
        pl.BlockSpec((1, ts), lambda b, j: (b, j)),
    ]
    args = [x, t]
    if has_weight:
        cw = jnp.asarray(class_weight, jnp.float32).reshape(c, 1)
        in_specs.append(pl.BlockSpec((c, 1), lambda b, j: (0, 0)))
        args.append(cw)

    out_shape = (jax.ShapeDtypeStruct((nb, s_tiles, 8, 128), jnp.float32),
                 jax.ShapeDtypeStruct((nb, s_tiles, 8, 128), jnp.float32))
    out_specs = [pl.BlockSpec((1, 1, 8, 128), lambda b, j: (b, j, 0, 0)),
                 pl.BlockSpec((1, 1, 8, 128), lambda b, j: (b, j, 0, 0))]

    kernel = _make_spatial_kernel(s, ts, c, has_weight, ignore_index)
    wnll, wsum = pl.pallas_call(
        kernel,
        out_shape=out_shape,
        grid_spec=pltpu.PrefetchScalarGridSpec(
            num_scalar_prefetch=0,
            grid=(nb, s_tiles),
            in_specs=in_specs,
            out_specs=out_specs,
        ),
        compiler_params=pltpu.CompilerParams(
            dimension_semantics=("parallel", "parallel"),
            vmem_limit_bytes=int(vmem_limit),
        ),
    )(*args)
    return jnp.sum(wnll[:, :, 0, 0]), jnp.sum(wsum[:, :, 0, 0])


@functools.partial(
    jax.jit,
    static_argnames=("row_tile", "spatial_tile", "ignore_index", "reduction"))
def icce_loss(inputs, targets, class_weight=None, *, row_tile=None,
              spatial_tile=None, ignore_index=DEFAULT_IGNORE_INDEX,
              reduction="elementwise_mean"):
    """CrossEntropyLoss(weight, ignore_index, reduction) forward.

    inputs: (N, C) or (N, C, d1, ..., dk); targets: (N,) or (N, d1, ..., dk).
    Returns a scalar float32.
    """
    if inputs.ndim == 2:
        num, den = _flat_loss(inputs, targets, class_weight, row_tile, ignore_index)
    else:
        num, den = _spatial_loss(inputs, targets, class_weight, spatial_tile,
                                 ignore_index)
    if reduction in ("elementwise_mean", "mean"):
        return num / den            # NaN when every element is ignored (as in PyTorch)
    if reduction == "sum":
        return num
    # TODO(synk): reduction='none' needs the per-element NLL map; not implemented.
    raise NotImplementedError(f"reduction={reduction!r} not supported")


def icce_loss_nchw(logits_nchw, targets, class_weight=None, **kw):
    return icce_loss(logits_nchw, targets, class_weight, **kw)


class ICCELoss:
    """Thin mirror of the PyTorch module's configer plumbing."""

    def __init__(self, configer=None):
        params = {}
        if configer is not None and configer.exists('loss', 'params'):
            params = configer.get('loss', 'params')
        w = params.get('ce_weight', None)
        self.weight = None if w is None else jnp.asarray(w, jnp.float32)
        self.reduction = params.get('ce_reduction', 'elementwise_mean')
        self.ignore_index = int(params.get('ce_ignore_index', DEFAULT_IGNORE_INDEX))

    def __call__(self, inputs, *targets, **kwargs):
        return icce_loss(inputs, targets[0], self.weight,
                         ignore_index=self.ignore_index, reduction=self.reduction)


# ----------------------------------------------------------------------------
# Reference + tests
# ----------------------------------------------------------------------------
def _ref_icce_loss(logits, targets, class_weight=None,
                   ignore_index=DEFAULT_IGNORE_INDEX):
    """Pure-JAX reference matching torch.nn.CrossEntropyLoss (mean reduction)."""
    logits = logits.astype(jnp.float32)
    lse = jax.nn.logsumexp(logits, axis=-1)
    valid = targets != ignore_index
    safe_t = jnp.where(valid, targets, 0)
    tgt_logit = jnp.take_along_axis(logits, safe_t[:, None], axis=-1)[:, 0]
    if class_weight is None:
        w = valid.astype(jnp.float32)
    else:
        w = class_weight[safe_t] * valid.astype(jnp.float32)
    return jnp.sum((lse - tgt_logit) * w) / jnp.sum(w)


if __name__ == "__main__":
    key = jax.random.PRNGKey(0)
    k1, k2, k3, k4 = jax.random.split(key, 4)

    # --- test 1: flat (N, C) f32 logits, class weights, ignored rows, ragged N ---
    N, C = 60, 32                                    # exercises the ragged last tile
    logits = jax.random.normal(k1, (N, C), dtype=jnp.float32)
    targets = jax.random.randint(k2, (N,), 0, C, dtype=jnp.int32)
    targets = targets.at[3].set(DEFAULT_IGNORE_INDEX)
    targets = targets.at[17].set(DEFAULT_IGNORE_INDEX)
    class_weight = jnp.linspace(0.5, 1.5, C, dtype=jnp.float32)

    loss = icce_loss(logits, targets, class_weight)
    jax.block_until_ready(loss)
    ref = _ref_icce_loss(logits, targets, class_weight)
    assert jnp.allclose(loss, ref, rtol=1e-5, atol=1e-5), (loss, ref)

    # --- test 2: bf16 logits (f32 math in-kernel) ---
    logits_bf16 = logits.astype(jnp.bfloat16)
    loss_bf = icce_loss(logits_bf16, targets, class_weight)
    jax.block_until_ready(loss_bf)
    ref_bf = _ref_icce_loss(logits_bf16.astype(jnp.float32), targets, class_weight)
    assert jnp.allclose(loss_bf, ref_bf, rtol=1e-4, atol=1e-4), (loss_bf, ref_bf)

    # --- test 3: NCHW segmentation-style inputs, no class weight (no transpose) ---
    B, Cc, H, W = 2, 4, 16, 16
    x = jax.random.normal(k3, (B, Cc, H, W), dtype=jnp.float32)
    t = jax.random.randint(k4, (B, H, W), 0, Cc, dtype=jnp.int32)
    t = t.at[0, 0, 0].set(DEFAULT_IGNORE_INDEX)
    loss2 = icce_loss(x, t)
    jax.block_until_ready(loss2)
    ref2 = _ref_icce_loss(jnp.moveaxis(x, 1, -1).reshape(-1, Cc), t.reshape(-1))
    assert jnp.allclose(loss2, ref2, rtol=1e-5, atol=1e-5), (loss2, ref2)

    # --- test 4: NCHW with class weights ---
    cw2 = jnp.array([0.25, 1.0, 2.0, 0.5], dtype=jnp.float32)
    loss3 = icce_loss(x, t, cw2)
    jax.block_until_ready(loss3)
    ref3 = _ref_icce_loss(jnp.moveaxis(x, 1, -1).reshape(-1, Cc), t.reshape(-1), cw2)
    assert jnp.allclose(loss3, ref3, rtol=1e-5, atol=1e-5), (loss3, ref3)

    print("KERNEL_OK")
</pallas_src>

<mosaic_0001>
module attributes {stable_mosaic.version = 11 : i64} {
  func.func @kernel(%arg0: i32, %arg1: memref<56x32xf32, #tpu.memory_space<vmem>>, %arg2: memref<56x1xi32, #tpu.memory_space<vmem>>, %arg3: memref<1x32xf32, #tpu.memory_space<vmem>>, %arg4: memref<1x8x128xf32, #tpu.memory_space<vmem>>, %arg5: memref<1x8x128xf32, #tpu.memory_space<vmem>>) attributes {dimension_semantics = [#tpu.dimension_semantics<parallel>], iteration_bounds = array<i64: 2>, scalar_prefetch = 0 : i64, scratch_operands = 0 : i64, tpu.core_type = #tpu.core_type<tc>, window_params = [{transform_indices = @transform_0, window_bounds = array<i64: 56, 32>}, {transform_indices = @transform_1, window_bounds = array<i64: 56, 1>}, {pipeline_mode = #tpu.pipeline_mode<synchronous>, transform_indices = @transform_2, window_bounds = array<i64: 1, 32>}, {transform_indices = @transform_3, window_bounds = array<i64: 1, 8, 128>}, {transform_indices = @transform_4, window_bounds = array<i64: 1, 8, 128>}]} {
    %c0 = arith.constant 0 : index
    %c0_0 = arith.constant 0 : index
    %0 = vector.load %arg1[%c0, %c0_0] : memref<56x32xf32, #tpu.memory_space<vmem>>, vector<56x32xf32>
    %c0_1 = arith.constant 0 : index
    %c0_2 = arith.constant 0 : index
    %1 = vector.load %arg2[%c0_1, %c0_2] : memref<56x1xi32, #tpu.memory_space<vmem>>, vector<56x1xi32>
    %cst = arith.constant dense<0xFF800000> : vector<56xf32>
    %2 = vector.multi_reduction <maximumf>, %0, %cst [1] : vector<56x32xf32> to vector<56xf32>
    %3 = vector.shape_cast %2 : vector<56xf32> to vector<56x1xf32>
    %4 = vector.broadcast %3 : vector<56x1xf32> to vector<56x32xf32>
    %5 = arith.subf %0, %4 : vector<56x32xf32>
    %6 = math.exp %5 : vector<56x32xf32>
    %cst_3 = arith.constant dense<0.000000e+00> : vector<56xf32>
    %7 = vector.multi_reduction <add>, %6, %cst_3 [1] : vector<56x32xf32> to vector<56xf32>
    %8 = vector.shape_cast %7 : vector<56xf32> to vector<56x1xf32>
    %9 = math.log %8 : vector<56x1xf32>
    %10 = arith.addf %9, %3 : vector<56x1xf32>
    %11 = tpu.iota {dimensions = array<i32: 1>} : vector<1x32xi32>
    %12 = vector.broadcast %11 : vector<1x32xi32> to vector<56x32xi32>
    %13 = vector.broadcast %1 : vector<56x1xi32> to vector<56x32xi32>
    %14 = arith.cmpi eq, %12, %13 : vector<56x32xi32>
    %cst_4 = arith.constant 0.000000e+00 : f32
    %15 = vector.broadcast %cst_4 : f32 to vector<56x32xf32>
    %16 = arith.select %14, %0, %15 : vector<56x32xi1>, vector<56x32xf32>
    %cst_5 = arith.constant dense<0.000000e+00> : vector<56xf32>
    %17 = vector.multi_reduction <add>, %16, %cst_5 [1] : vector<56x32xf32> to vector<56xf32>
    %18 = vector.shape_cast %17 : vector<56xf32> to vector<56x1xf32>
    %19 = arith.subf %10, %18 : vector<56x1xf32>
    %c-100_i32 = arith.constant -100 : i32
    %20 = vector.broadcast %c-100_i32 : i32 to vector<56x1xi32>
    %21 = arith.cmpi ne, %1, %20 : vector<56x1xi32>
    %c0_6 = arith.constant 0 : index
    %c0_7 = arith.constant 0 : index
    %22 = vector.load %arg3[%c0_6, %c0_7] : memref<1x32xf32, #tpu.memory_space<vmem>>, vector<1x32xf32>
    %cst_8 = arith.constant 0.000000e+00 : f32
    %23 = vector.shape_cast %22 : vector<1x32xf32> to vector<1x32xf32>
    %24 = vector.broadcast %23 : vector<1x32xf32> to vector<56x32xf32>
    %25 = vector.broadcast %cst_8 : f32 to vector<56x32xf32>
    %26 = arith.select %14, %24, %25 : vector<56x32xi1>, vector<56x32xf32>
    %cst_9 = arith.constant dense<0.000000e+00> : vector<56xf32>
    %27 = vector.multi_reduction <add>, %26, %cst_9 [1] : vector<56x32xf32> to vector<56xf32>
    %28 = vector.shape_cast %27 : vector<56xf32> to vector<56x1xf32>
    %cst_10 = arith.constant 0.000000e+00 : f32
    %29 = vector.broadcast %cst_10 : f32 to vector<56x1xf32>
    %30 = arith.select %21, %28, %29 : vector<56x1xi1>, vector<56x1xf32>
    %c56_i32 = arith.constant 56 : i32
    %31 = arith.muli %arg0, %c56_i32 : i32
    %32 = tpu.iota {dimensions = array<i32: 0>} : vector<56x1xi32>
    %33 = vector.broadcast %31 : i32 to vector<56x1xi32>
    %34 = arith.addi %33, %32 : vector<56x1xi32>
    %c60_i32 = arith.constant 60 : i32
    %35 = vector.broadcast %c60_i32 : i32 to vector<56x1xi32>
    %36 = arith.cmpi slt, %34, %35 : vector<56x1xi32>
    %37 = arith.mulf %30, %19 : vector<56x1xf32>
    %cst_11 = arith.constant 0.000000e+00 : f32
    %38 = vector.broadcast %cst_11 : f32 to vector<56x1xf32>
    %39 = arith.select %36, %37, %38 : vector<56x1xi1>, vector<56x1xf32>
    %cst_12 = arith.constant 0.000000e+00 : f32
    %40 = vector.broadcast %cst_12 : f32 to vector<56x1xf32>
    %41 = arith.select %36, %30, %40 : vector<56x1xi1>, vector<56x1xf32>
    %42 = vector.shape_cast %39 : vector<56x1xf32> to vector<1x56x1xf32>
    %cst_13 = arith.constant dense<0.000000e+00> : vector<1xf32>
    %43 = vector.multi_reduction <add>, %42, %cst_13 [1, 2] : vector<1x56x1xf32> to vector<1xf32>
    %44 = vector.shape_cast %43 : vector<1xf32> to vector<1x1x1xf32>
    %45 = vector.extract %44[0, 0, 0] : f32 from vector<1x1x1xf32>
    %46 = vector.broadcast %45 : f32 to vector<1x8x128xf32>
    %c0_14 = arith.constant 0 : index
    %c0_15 = arith.constant 0 : index
    %c0_16 = arith.constant 0 : index
    %47 = vector.load %arg4[%c0_14, %c0_15, %c0_16] : memref<1x8x128xf32, #tpu.memory_space<vmem>>, vector<1x8x128xf32>
    tpu.vector_store %arg4[%c0_14, %c0_15, %c0_16], %46 {strides = array<i32>} : memref<1x8x128xf32, #tpu.memory_space<vmem>>, vector<1x8x128xf32>,
    %48 = vector.shape_cast %41 : vector<56x1xf32> to vector<1x56x1xf32>
    %cst_17 = arith.constant dense<0.000000e+00> : vector<1xf32>
    %49 = vector.multi_reduction <add>, %48, %cst_17 [1, 2] : vector<1x56x1xf32> to vector<1xf32>
    %50 = vector.shape_cast %49 : vector<1xf32> to vector<1x1x1xf32>
    %51 = vector.extract %50[0, 0, 0] : f32 from vector<1x1x1xf32>
    %52 = vector.broadcast %51 : f32 to vector<1x8x128xf32>
    %c0_18 = arith.constant 0 : index
    %c0_19 = arith.constant 0 : index
    %c0_20 = arith.constant 0 : index
    %53 = vector.load %arg5[%c0_18, %c0_19, %c0_20] : memref<1x8x128xf32, #tpu.memory_space<vmem>>, vector<1x8x128xf32>
    tpu.vector_store %arg5[%c0_18, %c0_19, %c0_20], %52 {strides = array<i32>} : memref<1x8x128xf32, #tpu.memory_space<vmem>>, vector<1x8x128xf32>,
    return
  }
  func.func @transform_0(%arg0: i32) -> (i32, i32) {
    %c0_i32 = arith.constant 0 : i32
    %c0_i32_0 = arith.constant 0 : i32
    return %arg0, %c0_i32 : i32, i32
  }
  func.func @transform_1(%arg0: i32) -> (i32, i32) {
    %c0_i32 = arith.constant 0 : i32
    %c0_i32_0 = arith.constant 0 : i32
    return %arg0, %c0_i32 : i32, i32
  }
  func.func @transform_2(%arg0: i32) -> (i32, i32) {
    %c0_i32 = arith.constant 0 : i32
    %c0_i32_0 = arith.constant 0 : i32
    %c0_i32_1 = arith.constant 0 : i32
    return %c0_i32, %c0_i32_0 : i32, i32
  }
  func.func @transform_3(%arg0: i32) -> (i32, i32, i32) {
    %c0_i32 = arith.constant 0 : i32
    %c0_i32_0 = arith.constant 0 : i32
    %c0_i32_1 = arith.constant 0 : i32
    return %arg0, %c0_i32, %c0_i32_0 : i32, i32, i32
  }
  func.func @transform_4(%arg0: i32) -> (i32, i32, i32) {
    %c0_i32 = arith.constant 0 : i32
    %c0_i32_0 = arith.constant 0 : i32
    %c0_i32_1 = arith.constant 0 : i32
    return %arg0, %c0_i32, %c0_i32_0 : i32, i32, i32
  }
}

</mosaic_0001>

<bundles_post_ra>
// kernel: icce_loss.1
= control target key start
LH: loop header
LB: loop body
LE: loop exit
PB: predicated region body
PF: predicated region fallthrough
CT: control target
= control target key end

     0   :  { %s763_s15 = smov 0   ;;  %s1019_s0 = inlined_call_operand.vmem [shape: f32[60,32], index: 0, kind: input, shape index: {}]   ;;  %s1020_s1 = inlined_call_operand.vmem [shape: s32[60,1], index: 1, kind: input, shape index: {}]   ;;  %s1021_s2 = inlined_call_operand.vmem [shape: f32[1,32], index: 2, kind: input, shape index: {}]   ;;  %s1022_s3 = inlined_call_operand.vmem [shape: f32[2,8,128], index: 3, kind: output, shape index: {0}]   ;;  %s1023_s4 = inlined_call_operand.vmem [shape: f32[2,8,128], index: 4, kind: output, shape index: {1}]  }
   0x1 LB: > { %s769_s16 = sadd.s32 4294967295, %s735_s15   ;;  %p678_p0 = scmp.ge.s32.totalorder %s735_s15, 1  ;;  %s735_s15 = sphi %s763_s15, %s15_s15  }
   0x2   : > { %p193_p1 = scmp.lt.s32.totalorder %s735_s15, 3 }
   0x4   : > { %p194_p2 = pnand %p678_p0, %p193_p1 }
   0x5   : > { %s235_s17 = smul.u32 (!%p194_p2), 7, %s769_s16  ;;  %v737_v0 = vmov (!%p194_p2), 0   ;;  %vm285_vm0 = vcmask (!%p194_p2), 261120   ;;  %v370_v28 = vlaneseq (!%p194_p2)  ;;  %v851_v36 = vld [vmem:[%s1021_s2] ss:$0 sm:$0xff] (!%p194_p2)  ;;  %vm529_vm11 = vcmask (!%p194_p2), 7168  }
   0x6   : > { %197 = sbr.rel (%p194_p2) target bundleno = 576 (0x240), region = 32  ;;  %699 = vset.pattern.permute.xlu1 (!%p194_p2), %v737_v0  ;;  %700 = vset.pattern.permute.xlu0 (!%p194_p2), %v737_v0  ;;  %p263_p4 = scmp.lt.s32.totalorder (!%p194_p2), %s769_s16, 1 }
   0x7   : > { %p240_p3 = scmp.lt.s32.totalorder (!%p194_p2), %s235_s17, 7  ;;  %v842_v33 = vand.u32 (!%p194_p2), 127, %v370_v28  ;;  %s484_s27 = smul.u32 (!%p194_p2), 56, %s769_s16 }
   0xd   : > { %s1025_s17 = smov (!%p240_p3, %s235_s17), 7  ;;  %s1027_s16 = smov (!%p263_p4, %s769_s16), 1 }
   0xe   : > { %s679_s18 = sshll.u32 %s1025_s17, 3  ;;  %s681_s28 = sshll.u32 %s1027_s16, 3 }
   0xf   : > { %s243_s21 = scalar_lea.vmem %s1019_s0, %s679_s18  ;;  %s257_s24 = scalar_lea.vmem %s1020_s1, %s679_s18 }
  0x10   : > { %v777_v1 = vld [vmem:[%s243_s21 + $0x10] sm:$0xff]  ;;  %v271_v2 = vld [vmem:[%s243_s21] sm:$0xff]  ;;  %v779_v3 = vld [vmem:[%s243_s21 + $0x18] sm:$0xff]  ;;  %s266_s5 = scalar_lea.vmem %s1022_s3, %s681_s28  ;;  %s270_s9 = scalar_lea.vmem %s1023_s4, %s681_s28 }
  0x11   : > { %v292_v4 = vsel %vm285_vm0, %v777_v1, -inf  ;;  %v286_v5 = vsel %vm285_vm0, %v271_v2, -inf  ;;  %v784_v6 = vld [vmem:[%s243_s21 + $0x8] sm:$0xff]  ;;  %v295_v7 = vsel %vm285_vm0, %v779_v3, -inf  ;;  %v792_v10 = vld [vmem:[%s243_s21 + $0x20] sm:$0xff]  ;;  %v798_v13 = vld [vmem:[%s243_s21 + $0x30] sm:$0xff] }
  0x12   : > { %293 = vmax.xlane.f32.xlu1 %v292_v4  ;;  %287 = vmax.xlane.f32.xlu0 %v286_v5  ;;  %v289_v8 = vsel %vm285_vm0, %v784_v6, -inf  ;;  %v790_v9 = vld [vmem:[%s243_s21 + $0x28] sm:$0xff]  ;;  %v298_v12 = vsel %vm285_vm0, %v792_v10, -inf  ;;  %v304_v14 = vsel %vm285_vm0, %v798_v13, -inf  ;;  %v805_v15 = vld [vmem:[%s257_s24] sm:$0xff]  ;;  %v808_v16 = vld [vmem:[%s257_s24 + $0x10] sm:$0xff] }
  0x13   : > { %v301_v11 = vsel %vm285_vm0, %v790_v9, -inf  ;;  %v811_v17 = vld [vmem:[%s257_s24 + $0x18] sm:$0xff]  ;;  %v813_v18 = vld [vmem:[%s257_s24 + $0x8] sm:$0xff]  ;;  %v817_v19 = vld [vmem:[%s257_s24 + $0x20] sm:$0xff]  ;;  %vm435_vm9 = vcmp.ne.s32.totalorder %v805_v15, 4294967196  ;;  %vm437_vm13 = vcmp.ne.s32.totalorder %v808_v16, 4294967196 }
  0x14   : > { %v820_v20 = vld [vmem:[%s257_s24 + $0x28] sm:$0xff]  ;;  %v823_v21 = vld [vmem:[%s257_s24 + $0x30] sm:$0xff]  ;;  %vm436_vm8 = vcmp.ne.s32.totalorder %v813_v18, 4294967196  ;;  %vm438_vm15 = vcmp.ne.s32.totalorder %v811_v17, 4294967196 }
  0x16   : > { %296 = vmax.xlane.f32.xlu1 %v295_v7  ;;  %290 = vmax.xlane.f32.xlu0 %v289_v8 }
  0x1a   : > { %302 = vmax.xlane.f32.xlu1 %v301_v11  ;;  %299 = vmax.xlane.f32.xlu0 %v298_v12 }
  0x1e   : > { %305 = vmax.xlane.f32.xlu0 %v304_v14 }
  0x2b   : > { %373 = vperm.xlu1 %699, %v805_v15  }
  0x2f   : > { %379 = vperm.xlu1 %699, %v808_v16  }
  0x33   : > { %382 = vperm.xlu1 %699, %v811_v17  }
  0x34   : > { %376 = vperm.xlu0 %700, %v813_v18  }
  0x37   : > { %385 = vperm.xlu1 %699, %v817_v19  }
  0x3b   : > { %388 = vperm.xlu1 %699, %v820_v20  }
  0x3f   : > { %391 = vperm.xlu1 %699, %v823_v21  }
  0x9f   : > { %v826_v22 = vpop.xlane.xlu1 %293  ;;  %v828_v23 = vpop.xlane.xlu0 %287 }
  0xa0   : > { %v307_v24 = vsub.f32 %v271_v2, %v828_v23  ;;  %v309_v27 = vsub.f32 %v777_v1, %v826_v22 }
  0xa2   : > { %v314_v29 = vmul.f32 1.442695, %v307_v24  ;;  %v318_v31 = vmul.f32 1.442695, %v309_v27 }
  0xa3   : > { %v831_v25 = vpop.xlane.xlu1 %296  ;;  %v833_v26 = vpop.xlane.xlu0 %290 }
  0xa4   : > { %v310_v32 = vsub.f32 %v779_v3, %v831_v25  ;;  %701 = vpow2.f32 %v314_v29  ;;  %v308_v34 = vsub.f32 %v784_v6, %v833_v26 }
  0xa5   : > { %703 = vpow2.f32 %v318_v31 }
  0xa6   : > { %v320_v38 = vmul.f32 1.442695, %v310_v32  ;;  %v316_v40 = vmul.f32 1.442695, %v308_v34 }
  0xa7   : > { %v837_v30 = vpop.xlane.xlu1 %302  ;;  %v846_v35 = vpop.xlane.xlu0 %299 }
  0xa8   : > { %v312_v39 = vsub.f32 %v790_v9, %v837_v30  ;;  %v311_v41 = vsub.f32 %v792_v10, %v846_v35  ;;  %705 = vpow2.f32 %v320_v38 }
  0xa9   : > { %707 = vpow2.f32 %v316_v40 }
  0xaa   : > { %v324_v46 = vmul.f32 1.442695, %v312_v39  ;;  %v322_v48 = vmul.f32 1.442695, %v311_v41 }
  0xab   : > { %v374_v37 = vpop.permute.xlu1 %373  ;;  %v860_v45 = vpop.xlane.xlu0 %305 }
  0xac   : > { %vm393_vm1 = vcmp.eq.s32.totalorder %v842_v33, %v374_v37  ;;  %709 = vpow2.f32 %v324_v46  ;;  %v313_v51 = vsub.f32 %v798_v13, %v860_v45 }
  0xad   : > { %v400_v42 = vsel %vm393_vm1, %v271_v2, 0.0  ;;  %v449_v43 = vsel %vm393_vm1, %v851_v36, 0.0  ;;  %711 = vpow2.f32 %v322_v48  ;;  %vm439_vm1 = vcmp.ne.s32.totalorder %v817_v19, 4294967196 }
  0xae   : > { %v407_v44 = vsel %vm285_vm0, %v400_v42, 0.0  ;;  %v456_v47 = vsel %vm285_vm0, %v449_v43, 0.0  ;;  %v702_v49 = vpop.eup %701  ;;  %v326_v58 = vmul.f32 1.442695, %v313_v51 }
  0xaf   : > { %408 = vadd.xlane.f32.xlu1 %v407_v44  ;;  %v380_v52 = vpop.permute.xlu1 %379  ;;  %v704_v54 = vpop.eup %703  ;;  %v328_v55 = vsel %vm285_vm0, %v702_v49, 0.0 }
  0xb0   : > { %v334_v60 = vsel %vm285_vm0, %v704_v54, 0.0  ;;  %713 = vpow2.f32 %v326_v58  ;;  %vm395_vm3 = vcmp.eq.s32.totalorder %v842_v33, %v380_v52 }
  0xb1   : > { %v402_v11 = vsel %vm395_vm3, %v777_v1, 0.0  ;;  %v451_v12 = vsel %vm395_vm3, %v851_v36, 0.0  ;;  %vm440_vm3 = vcmp.ne.s32.totalorder %v820_v20, 4294967196 }
  0xb2   : > { %v706_v59 = vpop.eup %705  ;;  %v413_v14 = vsel %vm285_vm0, %v402_v11, 0.0  ;;  %v462_v24 = vsel %vm285_vm0, %v451_v12, 0.0 }
  0xb3   : > { %457 = vadd.xlane.f32.xlu1 %v456_v47  ;;  %v377_v50 = vpop.permute.xlu0 %376  ;;  %v708_v62 = vpop.eup %707  ;;  %v337_v2 = vsel %vm285_vm0, %v706_v59, 0.0 }
  0xb4   : > { %vm394_vm2 = vcmp.eq.s32.totalorder %v842_v33, %v377_v50  ;;  %v383_v63 = vpop.permute.xlu1 %382  ;;  %v331_v4 = vsel %vm285_vm0, %v708_v62, 0.0 }
  0xb5   : > { %v401_v53 = vsel %vm394_vm2, %v784_v6, 0.0  ;;  %v450_v57 = vsel %vm394_vm2, %v851_v36, 0.0  ;;  %vm396_vm4 = vcmp.eq.s32.totalorder %v842_v33, %v383_v63 }
  0xb6   : > { %v410_v56 = vsel %vm285_vm0, %v401_v53, 0.0  ;;  %v459_v61 = vsel %vm285_vm0, %v450_v57, 0.0  ;;  %v710_v0 = vpop.eup %709  ;;  %v403_v31 = vsel %vm396_vm4, %v779_v3, 0.0  ;;  %v452_v37 = vsel %vm396_vm4, %v851_v36, 0.0 }
  0xb7   : > { %329 = vadd.xlane.f32.xlu1 %v328_v55  ;;  %411 = vadd.xlane.f32.xlu0 %v410_v56  ;;  %v712_v5 = vpop.eup %711  ;;  %v343_v7 = vsel %vm285_vm0, %v710_v0, 0.0  ;;  %v416_v32 = vsel %vm285_vm0, %v403_v31, 0.0  ;;  %v465_v40 = vsel %vm285_vm0, %v452_v37, 0.0  ;;  %v908_v53 = vshrl.u32 %v370_v28, 7 }
  0xb8   : > { %v386_v6 = vpop.permute.xlu1 %385  ;;  %v340_v8 = vsel %vm285_vm0, %v712_v5, 0.0  ;;  %v911_v56 = vstv %s484_s27 }
  0xb9   : > { %vm397_vm5 = vcmp.eq.s32.totalorder %v842_v33, %v386_v6  ;;  %v488_v58 = vadd.s32 16, %v908_v53  ;;  %v489_v59 = vadd.s32 24, %v908_v53  ;;  %v917_v28 = vadd.s32 %v911_v56, %v908_v53 }
  0xba   : > { %v714_v27 = vpop.eup %713  ;;  %v404_v34 = vsel %vm397_vm5, %v792_v10, 0.0  ;;  %v453_v41 = vsel %vm397_vm5, %v851_v36, 0.0  ;;  %v490_v0 = vadd.s32 32, %v908_v53  ;;  %vm441_vm5 = vcmp.ne.s32.totalorder %v823_v21, 4294967196 }
  0xbb   : > { %335 = vadd.xlane.f32.xlu1 %v334_v60  ;;  %460 = vadd.xlane.f32.xlu0 %v459_v61  ;;  %v346_v1 = vsel %vm285_vm0, %v714_v27, 0.0  ;;  %v419_v39 = vsel %vm285_vm0, %v404_v34, 0.0  ;;  %v468_v10 = vsel %vm285_vm0, %v453_v41, 0.0  ;;  %v926_v5 = vadd.s32 %v911_v56, %v488_v58 }
  0xbc   : > { %v389_v29 = vpop.permute.xlu1 %388  ;;  %v929_v6 = vadd.s32 %v911_v56, %v489_v59  ;;  %vm501_vm10 = vcmp.lt.s32.totalorder %v917_v28, 60  ;;  %v937_v12 = vadd.s32 %v911_v56, %v490_v0 }
  0xbd   : > { %vm398_vm6 = vcmp.eq.s32.totalorder %v842_v33, %v389_v29  ;;  %vm503_vm14 = vcmp.lt.s32.totalorder %v926_v5, 60 }
  0xbe   : > { %v405_v3 = vsel %vm398_vm6, %v790_v9, 0.0  ;;  %v454_v44 = vsel %vm398_vm6, %v851_v36, 0.0  ;;  %vm505_vm2 = vcmp.lt.s32.totalorder %v937_v12, 60 }
  0xbf   : > { %338 = vadd.xlane.f32.xlu1 %v337_v2  ;;  %332 = vadd.xlane.f32.xlu0 %v331_v4  ;;  %v422_v42 = vsel %vm285_vm0, %v405_v3, 0.0  ;;  %v471_v47 = vsel %vm285_vm0, %v454_v44, 0.0 }
  0xc0   : > { %v392_v38 = vpop.permute.xlu1 %391 }
  0xc1   : > { %vm399_vm7 = vcmp.eq.s32.totalorder %v842_v33, %v392_v38 }
  0xc2   : > { %v406_v43 = vsel %vm399_vm7, %v798_v13, 0.0  ;;  %v455_v9 = vsel %vm399_vm7, %v851_v36, 0.0  ;;  %v487_v36 = vadd.s32 8, %v908_v53 }
  0xc3   : > { %344 = vadd.xlane.f32.xlu1 %v343_v7  ;;  %341 = vadd.xlane.f32.xlu0 %v340_v8  ;;  %v425_v46 = vsel %vm285_vm0, %v406_v43, 0.0  ;;  %v474_v33 = vsel %vm285_vm0, %v455_v9, 0.0  ;;  %vm504_vm0 = vcmp.lt.s32.totalorder %v929_v6, 60 }
  0xc4   : > { %v920_v63 = vadd.s32 %v911_v56, %v487_v36 }
  0xc6   : > { %vm502_vm12 = vcmp.lt.s32.totalorder %v920_v63, 60 }
  0xc7   : > { %414 = vadd.xlane.f32.xlu1 %v413_v14  ;;  %463 = vadd.xlane.f32.xlu0 %v462_v24  ;;  %v491_v14 = vadd.s32 40, %v908_v53 }
  0xc9   : > { %v953_v15 = vadd.s32 %v911_v56, %v491_v14 }
  0xcb   : > { %417 = vadd.xlane.f32.xlu1 %v416_v32  ;;  %347 = vadd.xlane.f32.xlu0 %v346_v1  ;;  %vm506_vm4 = vcmp.lt.s32.totalorder %v953_v15, 60 }
  0xcf   : > { %420 = vadd.xlane.f32.xlu1 %v419_v39  ;;  %466 = vadd.xlane.f32.xlu0 %v465_v40 }
  0xd3   : > { %423 = vadd.xlane.f32.xlu1 %v422_v42  ;;  %469 = vadd.xlane.f32.xlu0 %v468_v10 }
  0xd7   : > { %426 = vadd.xlane.f32.xlu1 %v425_v46  ;;  %472 = vadd.xlane.f32.xlu0 %v471_v47 }
  0xdb   : > { %475 = vadd.xlane.f32.xlu0 %v474_v33  ;;  %v492_v33 = vadd.s32 48, %v908_v53 }
  0xdd   : > { %v500_v59 = vadd.s32 %v911_v56, %v492_v33 }
  0xdf   : > { %vm507_vm6 = vcmp.lt.s32.totalorder %v500_v59, 60 }
 0x13c   : > { %v902_v48 = vpop.xlane.xlu1 %408 }
 0x140   : > { %v458_v49 = vpop.xlane.xlu1 %457 }
 0x141   : > { %v477_v16 = vsel %vm435_vm9, %v458_v49, 0.0 }
 0x142   : > { %v522_v3 = vsel %vm501_vm10, %v477_v16, 0.0 }
 0x144   : > { %v330_v50 = vpop.xlane.xlu1 %329  ;;  %v904_v51 = vpop.xlane.xlu0 %411 }
 0x145   : > { %715 = vlog2.f32 %v330_v50 }
 0x148   : > { %v336_v13 = vpop.xlane.xlu1 %335  ;;  %v461_v52 = vpop.xlane.xlu0 %460 }
 0x149   : > { %717 = vlog2.f32 %v336_v13 }
 0x14c   : > { %v339_v54 = vpop.xlane.xlu1 %338  ;;  %v333_v55 = vpop.xlane.xlu0 %332 }
 0x14d   : > { %719 = vlog2.f32 %v339_v54 }
 0x14e   : > { %721 = vlog2.f32 %v333_v55 }
 0x14f   : > { %v716_v57 = vpop.eup %715 }
 0x150   : > { %v350_v60 = vmul.f32 0.6931472, %v716_v57  ;;  %v345_v61 = vpop.xlane.xlu1 %344  ;;  %v342_v62 = vpop.xlane.xlu0 %341 }
 0x151   : > { %723 = vlog2.f32 %v345_v61 }
 0x152   : > { %725 = vlog2.f32 %v342_v62  ;;  %v363_v4 = vadd.f32 %v350_v60, %v828_v23  ;;  %v478_v23 = vsel %vm436_vm8, %v461_v52, 0.0 }
 0x153   : > { %v718_v2 = vpop.eup %717  ;;  %v523_v34 = vsel %vm502_vm12, %v478_v23, 0.0 }
 0x154   : > { %v354_v7 = vmul.f32 0.6931472, %v718_v2  ;;  %v415_v8 = vpop.xlane.xlu1 %414  ;;  %v464_v11 = vpop.xlane.xlu0 %463  ;;  %v428_v27 = vsub.f32 %v363_v4, %v902_v48 }
 0x156   : > { %v365_v18 = vadd.f32 %v354_v7, %v826_v22  ;;  %v479_v22 = vsel %vm437_vm13, %v464_v11, 0.0  ;;  %v508_v41 = vmul.f32 %v477_v16, %v428_v27 }
 0x157   : > { %v720_v24 = vpop.eup %719  ;;  %v524_v10 = vsel %vm503_vm14, %v479_v22, 0.0 }
 0x158   : > { %v722_v29 = vpop.eup %721  ;;  %v356_v31 = vmul.f32 0.6931472, %v720_v24  ;;  %v418_v32 = vpop.xlane.xlu1 %417  ;;  %v430_v38 = vsub.f32 %v365_v18, %v415_v8  ;;  %v557_v52 = vsel %vm529_vm11, %v524_v10, 0.0  ;;  %v515_v53 = vsel %vm501_vm10, %v508_v41, 0.0 }
 0x159   : > { %v348_v1 = vpop.xlane.xlu0 %347  ;;  %v352_v37 = vmul.f32 0.6931472, %v722_v29 }
 0x15a   : > { %727 = vlog2.f32 %v348_v1  ;;  %v366_v39 = vadd.f32 %v356_v31, %v831_v25  ;;  %v555_v25 = vsel %vm529_vm11, %v523_v34, 0.0  ;;  %v510_v50 = vmul.f32 %v479_v22, %v430_v38 }
 0x15b   : > { %v724_v40 = vpop.eup %723  ;;  %v364_v42 = vadd.f32 %v352_v37, %v833_v26  ;;  %v554_v26 = vsel %vm529_vm11, %v522_v3, 0.0 }
 0x15c   : > { %v726_v43 = vpop.eup %725  ;;  %v360_v44 = vmul.f32 0.6931472, %v724_v40  ;;  %v431_v46 = vsub.f32 %v366_v39, %v418_v32  ;;  %v421_v47 = vpop.xlane.xlu1 %420  ;;  %v556_v57 = vadd.f32 %v555_v25, %v554_v26  ;;  %v517_v61 = vsel %vm503_vm14, %v510_v50, 0.0 }
 0x15d   : > { %v467_v9 = vpop.xlane.xlu0 %466  ;;  %v429_v48 = vsub.f32 %v364_v42, %v904_v51  ;;  %v358_v49 = vmul.f32 0.6931472, %v726_v43  ;;  %v533_v11 = vsel %vm529_vm11, %v517_v61, 0.0 }
 0x15e   : > { %v480_v13 = vsel %vm438_vm15, %v467_v9, 0.0  ;;  %v368_v17 = vadd.f32 %v360_v44, %v837_v30  ;;  %v558_v30 = vadd.f32 %v557_v52, %v556_v57 }
 0x15f   : > { %v525_v54 = vsel %vm504_vm0, %v480_v13, 0.0  ;;  %v509_v55 = vmul.f32 %v478_v23, %v429_v48  ;;  %v367_v51 = vadd.f32 %v358_v49, %v846_v35  ;;  %v511_v36 = vmul.f32 %v480_v13, %v431_v46 }
 0x160   : > { %v559_v28 = vsel %vm529_vm11, %v525_v54, 0.0  ;;  %v424_v0 = vpop.xlane.xlu1 %423  ;;  %v530_v35 = vsel %vm529_vm11, %v515_v53, 0.0 }
 0x161   : > { %v470_v58 = vpop.xlane.xlu0 %469  ;;  %v516_v60 = vsel %vm502_vm12, %v509_v55, 0.0  ;;  %v432_v62 = vsub.f32 %v367_v51, %v421_v47  ;;  %v518_v63 = vsel %vm504_vm0, %v511_v36, 0.0  ;;  %v560_v18 = vadd.f32 %v559_v28, %v558_v30 }
 0x162   : > { %v531_v2 = vsel %vm529_vm11, %v516_v60, 0.0  ;;  %v481_v4 = vsel %vm439_vm1, %v470_v58, 0.0  ;;  %v433_v14 = vsub.f32 %v368_v17, %v424_v0  ;;  %v535_v16 = vsel %vm529_vm11, %v518_v63, 0.0 }
 0x163   : > { %v532_v56 = vadd.f32 %v531_v2, %v530_v35  ;;  %v512_v8 = vmul.f32 %v481_v4, %v432_v62  ;;  %v526_v5 = vsel %vm505_vm2, %v481_v4, 0.0 }
 0x164   : > { %v728_v7 = vpop.eup %727  ;;  %v561_v29 = vsel %vm529_vm11, %v526_v5, 0.0  ;;  %v427_v34 = vpop.xlane.xlu1 %426 }
 0x165   : > { %v362_v23 = vmul.f32 0.6931472, %v728_v7  ;;  %v473_v24 = vpop.xlane.xlu0 %472  ;;  %v534_v27 = vadd.f32 %v533_v11, %v532_v56  ;;  %v519_v19 = vsel %vm505_vm2, %v512_v8, 0.0  ;;  %v562_v38 = vadd.f32 %v561_v29, %v560_v18 }
 0x166   : > { %v482_v6 = vsel %vm440_vm3, %v473_v24, 0.0  ;;  %v537_v12 = vsel %vm529_vm11, %v519_v19, 0.0 }
 0x167   : > { %v369_v31 = vadd.f32 %v362_v23, %v860_v45  ;;  %v513_v22 = vmul.f32 %v482_v6, %v433_v14  ;;  %v527_v32 = vsel %vm506_vm4, %v482_v6, 0.0  ;;  %v536_v1 = vadd.f32 %v535_v16, %v534_v27 }
 0x168   : > { %v563_v37 = vsel %vm529_vm11, %v527_v32, 0.0 }
 0x169   : > { %v434_v39 = vsub.f32 %v369_v31, %v427_v34  ;;  %v520_v20 = vsel %vm506_vm4, %v513_v22, 0.0  ;;  %v476_v40 = vpop.xlane.xlu0 %475  ;;  %v538_v3 = vadd.f32 %v537_v12, %v536_v1  ;;  %v564_v43 = vadd.f32 %v563_v37, %v562_v38 }
 0x16a   : > { %v483_v45 = vsel %vm441_vm5, %v476_v40, 0.0  ;;  %v539_v41 = vsel %vm529_vm11, %v520_v20, 0.0 }
 0x16b   : > { %v514_v42 = vmul.f32 %v483_v45, %v434_v39  ;;  %v528_v10 = vsel %vm507_vm6, %v483_v45, 0.0  ;;  %v540_v47 = vadd.f32 %v539_v41, %v538_v3 }
 0x16c   : > { %v565_v25 = vsel %vm529_vm11, %v528_v10, 0.0 }
 0x16d   : > { %v566_v44 = vadd.f32 %v565_v25, %v564_v43  ;;  %v521_v46 = vsel %vm507_vm6, %v514_v42, 0.0 }
 0x16e   : > { %v541_v9 = vsel %vm529_vm11, %v521_v46, 0.0 }
 0x16f   : > { %567 = vadd.xlane.f32.xlu0 %v566_v44  ;;  %v542_v15 = vadd.f32 %v541_v9, %v540_v47 }
 0x171   : > { %543 = vadd.xlane.f32.xlu1 %v542_v15 }
 0x1fc   : > { %v568_v33 = vpop.xlane.xlu0 %567 }
 0x1fd   : > { %v569_v21 = vrot.slane %v568_v33, 4 }
 0x1fe   : > { %v544_v48 = vpop.xlane.xlu1 %543 }
 0x1ff   : > { %v570_v49 = vadd.f32 %v569_v21, %v568_v33  ;;  %v545_v50 = vrot.slane %v544_v48, 4 }
 0x201   : > { %v571_v13 = vrot.slane %v570_v49, 2  ;;  %v546_v26 = vadd.f32 %v545_v50, %v544_v48 }
 0x203   : > { %v572_v52 = vadd.f32 %v571_v13, %v570_v49  ;;  %v547_v54 = vrot.slane %v546_v26, 2 }
 0x205   : > { %v548_v55 = vadd.f32 %v547_v54, %v546_v26  ;;  %v573_v53 = vrot.slane %v572_v52, 1 }
 0x207   : > { %v549_v51 = vrot.slane %v548_v55, 1  ;;  %v574_v57 = vadd.f32 %v573_v53, %v572_v52 }
 0x209   : > { %v550_v36 = vadd.f32 %v549_v51, %v548_v55 }
 0x20b   : > { %686 = vpush %v550_v36 }
 0x20c   : > { %688 = vpush %v574_v57 }
 0x23c   : > { %s687_s6 = spop %686 }
 0x23d   : > { %v552_v17 = vstv %s687_s6  ;;  %s689_s10 = spop %688 }
 0x23e   : > { %553 = vst [vmem:[%s266_s5] sm:$0xff] %v552_v17  ;;  %v576_v58 = vstv %s689_s10 }
 0x23f   : > { %577 = vst [vmem:[%s270_s9] sm:$0xff] %v576_v58 }
 0x240 PF: > { %s15_s15 = sadd.s32 1, %s735_s15  }
 0x241   : > { %p12_p5 = scmp.ge.s32.totalorder %s15_s15, 4  }
 0x243   :  { %14 = sbr.rel (!%p12_p5) target bundleno = 1 (0x1), region = 77 }

</bundles_post_ra>
